<compile_context>
chip_gen: v7x
topology: tpu7x:2x2x1
jax: 0.10.0
libtpu: 0.0.40
codegen_flags: <defaults>
</compile_context>

<pallas_src>
import jax
import jax.numpy as jnp
from jax.experimental import pallas as pl
from jax.experimental.pallas import tpu as pltpu

IN_FEATURES = 1
OUT_FEATURES = 1

_LANE = 1024                   # lane-dense last dim (multiple of 128)
_MAX_BLOCK_ROWS = 2048         # 2048*1024*4B = 8 MiB/block; in+out double-buffered = 32 MiB
_VMEM_LIMIT_BYTES = 48 << 20   # safe on v5e/v6e (128 MiB phys) and v7x (64 MiB/TC)
_SPLIT_MIN_ROWS = 16           # below this, one full-array block; splitting not worth it
_PALLAS_MIN_ELEMS = 1 << 20    # below ~1M elems, fused XLA wins (launch/repack overhead)


def _axpb_kernel(x_ref, w_ref, b_ref, o_ref):
    # x_ref / o_ref: (block_rows, _LANE) VMEM tiles; w_ref / b_ref: (1,) SMEM scalars.
    # Pure VPU fused multiply-add; binding slot is vld/vst (HBM-bandwidth-bound).
    o_ref[...] = x_ref[...] * w_ref[0] + b_ref[0]


def _round_up(v, m):
    return (v + m - 1) // m * m


def _bulk_pallas(x2d, w_s, b_s):
    """Affine map over a lane-dense (rows, _LANE) slab via Pallas."""
    rows, lane = x2d.shape
    dtype = x2d.dtype

    if rows <= _SPLIT_MIN_ROWS:
        # Single block equal to the full array dims (legal even if rows % 8 != 0).
        block_rows, grid_rows = rows, 1
    else:
        # Pick an 8-multiple block that (a) stays inside the VMEM budget and
        # (b) yields an even grid of >= 2 steps so v7x's two TCs split the work.
        num_blocks = max(pl.cdiv(rows, _MAX_BLOCK_ROWS), 2)
        if num_blocks % 2:
            num_blocks += 1
        block_rows = min(_round_up(pl.cdiv(rows, num_blocks), 8), _MAX_BLOCK_ROWS)
        grid_rows = pl.cdiv(rows, block_rows)   # last block may be partial; Pallas masks it

    return pl.pallas_call(
        _axpb_kernel,
        out_shape=jax.ShapeDtypeStruct((rows, lane), dtype),
        grid_spec=pltpu.PrefetchScalarGridSpec(
            num_scalar_prefetch=0,
            grid=(grid_rows,),
            in_specs=[
                pl.BlockSpec((block_rows, lane), lambda i: (i, 0)),
                pl.BlockSpec(memory_space=pltpu.MemorySpace.SMEM),
                pl.BlockSpec(memory_space=pltpu.MemorySpace.SMEM),
            ],
            out_specs=pl.BlockSpec((block_rows, lane), lambda i: (i, 0)),
        ),
        compiler_params=pltpu.CompilerParams(
            # Row axis is independent -> "parallel": v7x's 2 TCs each take part
            # of the grid; harmless (serial) on single-TC v5e/v6e.
            dimension_semantics=("parallel",),
            vmem_limit_bytes=_VMEM_LIMIT_BYTES,
        ),
        cost_estimate=pl.CostEstimate(
            flops=2 * rows * lane,
            transcendentals=0,
            bytes_accessed=2 * rows * lane * x2d.dtype.itemsize,  # read x + write out
        ),
    )(x2d, w_s, b_s)


def linear_forward(x, w, b, *, force_pallas=False):
    """x: (N, 1), w: (1, 1), b: (1,).  Returns (N, 1) = x @ w.T + b."""
    n, in_f = x.shape
    out_f, in_f_w = w.shape
    assert in_f == IN_FEATURES and in_f_w == IN_FEATURES and out_f == OUT_FEATURES
    dtype = x.dtype

    w_scalar = w.reshape(()).astype(dtype)
    b_scalar = b.reshape(()).astype(dtype)
    total = n * in_f  # == n for in_features == 1

    # Small/medium inputs: fused XLA elementwise is already at HBM roofline
    # with zero extra copies; Pallas only pays off at large N.
    if total < _PALLAS_MIN_ELEMS and not force_pallas:
        return x * w_scalar + b_scalar

    flat = x.reshape(total)                  # free: x is a contiguous (N, 1) array
    bulk = (total // _LANE) * _LANE          # lane-aligned prefix -> Pallas
    tail = total - bulk                      # < _LANE leftover -> fused XLA

    w_s = w.reshape(1).astype(dtype)         # (1,) SMEM scalars for the kernel
    b_s = b.reshape(1).astype(dtype)

    pieces = []
    if bulk:
        # When total is lane-aligned this slice+reshape is a no-op bitcast.
        x2d = flat[:bulk].reshape(bulk // _LANE, _LANE)
        out2d = _bulk_pallas(x2d, w_s, b_s)
        pieces.append(out2d.reshape(bulk))
    if tail:
        pieces.append(flat[bulk:] * w_scalar + b_scalar)

    out_flat = pieces[0] if len(pieces) == 1 else jnp.concatenate(pieces)
    return out_flat.reshape(n, out_f)


if __name__ == "__main__":
    key = jax.random.PRNGKey(0)
    kx, kw, kb = jax.random.split(key, 3)

    # Deterministic parameter init mimicking nn.Linear(1, 1):
    # uniform(-1/sqrt(in_features), 1/sqrt(in_features))
    bound = 1.0 / (IN_FEATURES ** 0.5)
    w = jax.random.uniform(kw, (OUT_FEATURES, IN_FEATURES),
                           minval=-bound, maxval=bound, dtype=jnp.float32)
    b = jax.random.uniform(kb, (OUT_FEATURES,),
                           minval=-bound, maxval=bound, dtype=jnp.float32)

    # Batches chosen so the Pallas path actually executes and covers:
    #   2048  -> lane-aligned zero-copy path (single full-array block),
    #   2051  -> bulk Pallas block + XLA tail,
    #   20000 -> 19 rows: 2-step grid (v7x TC split) with a partial last block + tail.
    # force_pallas=True so the kernel runs at these demo sizes (production call
    # sites leave it False and let fused XLA handle N < ~1M).
    for batch in (2048, 2051, 20000):
        x = jax.random.normal(kx, (batch, IN_FEATURES), dtype=jnp.float32)
        out = linear_forward(x, w, b, force_pallas=True)
        jax.block_until_ready(out)
        ref = x @ w.T + b
        assert out.shape == (batch, OUT_FEATURES)
        assert jnp.allclose(out, ref, atol=1e-5, rtol=1e-5), f"mismatch at batch={batch}"

    print("KERNEL_OK")
</pallas_src>

<mosaic_0001>
module attributes {stable_mosaic.version = 11 : i64} {
  func.func @_axpb_kernel(%arg0: i32, %arg1: memref<2x1024xf32, #tpu.memory_space<vmem>>, %arg2: memref<1xf32, #tpu.memory_space<smem>>, %arg3: memref<1xf32, #tpu.memory_space<smem>>, %arg4: memref<2x1024xf32, #tpu.memory_space<vmem>>) attributes {dimension_semantics = [#tpu.dimension_semantics<parallel>], iteration_bounds = array<i64: 1>, scalar_prefetch = 0 : i64, scratch_operands = 0 : i64, tpu.core_type = #tpu.core_type<tc>, window_params = [{transform_indices = @transform_0, window_bounds = array<i64: 2, 1024>}, {transform_indices = @transform_1, window_bounds = array<i64: 1>}, {transform_indices = @transform_2, window_bounds = array<i64: 1>}, {transform_indices = @transform_3, window_bounds = array<i64: 2, 1024>}]} {
    %c0 = arith.constant 0 : index
    %c0_0 = arith.constant 0 : index
    %0 = vector.load %arg1[%c0, %c0_0] : memref<2x1024xf32, #tpu.memory_space<vmem>>, vector<2x1024xf32>
    %c0_1 = arith.constant 0 : index
    %1 = memref.load %arg2[%c0_1] : memref<1xf32, #tpu.memory_space<smem>>
    %2 = vector.broadcast %1 : f32 to vector<2x1024xf32>
    %3 = arith.mulf %0, %2 : vector<2x1024xf32>
    %c0_2 = arith.constant 0 : index
    %4 = memref.load %arg3[%c0_2] : memref<1xf32, #tpu.memory_space<smem>>
    %5 = vector.broadcast %4 : f32 to vector<2x1024xf32>
    %6 = arith.addf %3, %5 : vector<2x1024xf32>
    %c0_3 = arith.constant 0 : index
    %c0_4 = arith.constant 0 : index
    %7 = vector.load %arg4[%c0_3, %c0_4] : memref<2x1024xf32, #tpu.memory_space<vmem>>, vector<2x1024xf32>
    tpu.vector_store %arg4[%c0_3, %c0_4], %6 {strides = array<i32>} : memref<2x1024xf32, #tpu.memory_space<vmem>>, vector<2x1024xf32>,
    return
  }
  func.func @transform_0(%arg0: i32) -> (i32, i32) {
    %c0_i32 = arith.constant 0 : i32
    %c0_i32_0 = arith.constant 0 : i32
    return %arg0, %c0_i32 : i32, i32
  }
  func.func @transform_1(%arg0: i32) -> i32 {
    %c0_i32 = arith.constant 0 : i32
    %c0_i32_0 = arith.constant 0 : i32
    return %c0_i32 : i32
  }
  func.func @transform_2(%arg0: i32) -> i32 {
    %c0_i32 = arith.constant 0 : i32
    %c0_i32_0 = arith.constant 0 : i32
    return %c0_i32 : i32
  }
  func.func @transform_3(%arg0: i32) -> (i32, i32) {
    %c0_i32 = arith.constant 0 : i32
    %c0_i32_0 = arith.constant 0 : i32
    return %arg0, %c0_i32 : i32, i32
  }
}

</mosaic_0001>

<bundles_post_ra>
// kernel: tpu_custom_call.1
= control target key start
LH: loop header
LB: loop body
LE: loop exit
PB: predicated region body
PF: predicated region fallthrough
CT: control target
= control target key end

     0   :  { %10 = vsyncpa [#allocation5], 0  ;;  %s158_s0 = inlined_call_operand.hbm [shape: f32[2,1024], index: 0, kind: input, shape index: {}]   ;;  %s159_s1 = inlined_call_operand.<no memory space> [shape: f32[1], index: 1, kind: input, shape index: {}]   ;;  %s160_s2 = inlined_call_operand.<no memory space> [shape: f32[1], index: 2, kind: input, shape index: {}]   ;;  %s161_s3 = inlined_call_operand.hbm [shape: f32[2,1024], index: 3, kind: output, shape index: {}]  }
   0x1   :  { %11 = vsyncpa [#allocation6], 0  ;;  %s106_s12 = smov [#allocation4]   ;;  %s58_s16 = scalar_lea.hbm %s158_s0, 256 }
   0x2   :  { %s18_s13 = sshll.u32 %s106_s12, 4  ;;  %p59_p0 = scmp.ne.s32.totalorder %s158_s0, %s58_s16  ;;  %s19_s13 = int_to_ptr.vmem [resolvable:$true] %s18_s13 }
   0x3   :  { %p62_p1 = scmp.lt.u32.totalorder %s58_s16, %s158_s0 }
   0x5   :  { %p64_p2 = pnand %p62_p1, %p59_p0 }
   0x7   :  { %67 = shalt.err (!%p64_p2)
}
   0x8   :  { %s68_s21 = scalar_lea.vmem %s19_s13, 256  ;;  %p73_p4 = scmp.lt.s32.totalorder %s19_s13, %s19_s13 }
   0x9   :  { %p69_p3 = scmp.ne.s32.totalorder %s19_s13, %s68_s21  ;;  %p74_p5 = scmp.lt.s32.totalorder %s68_s21, %s68_s21 }
   0xb   :  { %p75_p6 = por %p74_p5, %p73_p4 }
   0xd   :  { %p76_p7 = pnand %p75_p6, %p69_p3 }
   0xf   :  { %79 = shalt.err (!%p76_p7)
}
  0x10   :  { %21 = dma.hbm_to_vmem [thread:$0]  %s158_s0, 256, %s19_s13, [#allocation5]  }
  0x11   :  { %102 = dma.done.wait [#allocation5], 256  }
  0x12   :  { %103 = vsyncadd [#allocation5], 4294967040  ;;  %v32_v0 = vstv %s159_s1  ;;  %v29_v1 = vld [vmem:[#allocation4] sm:$0xff]  ;;  %v36_v2 = vstv %s160_s2  ;;  %v30_v3 = vld [vmem:[#allocation4 + $0x8] sm:$0xff]  ;;  %s107_s28 = smov [#allocation7]  }
  0x13   :  { %s47_s29 = sshll.u32 %s107_s28, 4  ;;  %v33_v4 = vmul.f32 %v32_v0, %v29_v1  ;;  %v34_v5 = vmul.f32 %v32_v0, %v30_v3  ;;  %s48_s29 = int_to_ptr.vmem [resolvable:$true] %s47_s29 }
  0x14   :  { %s80_s0 = scalar_lea.vmem %s48_s29, 256  ;;  %p85_p9 = scmp.lt.s32.totalorder %s48_s29, %s48_s29 }
  0x15   :  { %v37_v6 = vadd.f32 %v36_v2, %v33_v4  ;;  %v38_v7 = vadd.f32 %v36_v2, %v34_v5  ;;  %p81_p8 = scmp.ne.s32.totalorder %s48_s29, %s80_s0  ;;  %p86_p10 = scmp.lt.s32.totalorder %s80_s0, %s80_s0 }
  0x17   :  { %39 = vst [vmem:[#allocation7] sm:$0xff] %v37_v6  ;;  %40 = vst [vmem:[#allocation7 + $0x8] sm:$0xff] %v38_v7  ;;  %p87_p11 = por %p86_p10, %p85_p9 }
  0x19   :  { %p88_p12 = pnand %p87_p11, %p81_p8 }
  0x1b   :  { %91 = shalt.err (!%p88_p12)
}
  0x1c   :  { %s92_s2 = scalar_lea.hbm %s161_s3, 256 }
  0x1d   :  { %p93_p13 = scmp.ne.s32.totalorder %s161_s3, %s92_s2  ;;  %p96_p0 = scmp.lt.u32.totalorder %s92_s2, %s161_s3 }
  0x1f   :  { %p98_p1 = pnand %p96_p0, %p93_p13 }
  0x21   :  { %101 = shalt.err (!%p98_p1)
}
  0x22   :  { %50 = dma.vmem_to_hbm [thread:$0]  %s48_s29, 256, %s161_s3, [#allocation6]  }
  0x23   :  { %104 = dma.done.wait [#allocation6], 256  }
  0x24   :  { %105 = vsyncadd [#allocation6], 4294967040 }
  0x25   :  { %54 = vsyncpa [#allocation5], 1 }
  0x26   :  { %55 = vsyncpa [#allocation6], 1 }

</bundles_post_ra>
